<compile_context>
chip_gen: v6e
topology: v6e:2x2x1
jax: 0.10.0
libtpu: 0.0.40
codegen_flags: <defaults>
</compile_context>

<pallas_src>
import jax
import jax.numpy as jnp
from jax.experimental import pallas as pl
from jax.experimental.pallas import tpu as pltpu

KS = 3  # kernel size (ks=3, stride=1, padding=1, the module defaults)


def convbnrelu_kernel(p_ref, w_ref, b_ref, o_ref):
    """One (batch, row-tile) step.

    p_ref: (1, 9*Cin, TH*W)  bf16 im2col patches (spatial on the lane axis)
    w_ref: (Cout, 9*Cin)     bf16 conv weights with BN scale folded in
    b_ref: (Cout, 1)         f32 folded BN bias
    o_ref: (1, Cout, TH*W)   f32 output tile (lane-dense: TH*W % 128 == 0)
    """
    # Single MXU matmul: (Cout, 9*Cin) x (9*Cin, TH*W) -> (Cout, TH*W), f32 acc.
    acc = jnp.dot(w_ref[...], p_ref[0], preferred_element_type=jnp.float32)
    # Fused BN bias + ReLU epilogue in f32 (scale already folded into weights).
    y = jnp.maximum(acc + b_ref[...], 0.0)
    # Leading unit dim only -> trivial (layout-preserving) reshape, unmasked store.
    o_ref[...] = y.reshape(o_ref.shape).astype(o_ref.dtype)


def conv_bn_relu(x_nchw, w, gamma, beta, running_mean, running_var, eps=1e-5):
    """x_nchw: (N, Cin, H, W) f32.  w: (KS, KS, Cin, Cout) f32 (HWIO)."""
    N, Cin, H, W = x_nchw.shape
    Cout = w.shape[-1]
    K9 = KS * KS * Cin

    # ---- wrapper glue (plain JAX): pad + im2col + BN folding, all in NCHW ----
    x_pad = jnp.pad(x_nchw, ((0, 0), (0, 0), (1, 1), (1, 1)))
    # taps[n, ky*KS+kx, ci, h, w] = x_pad[n, ci, h+ky, w+kx]
    taps = jnp.stack(
        [x_pad[:, :, ky:ky + H, kx:kx + W] for ky in range(KS) for kx in range(KS)],
        axis=1)
    # (N, 9*Cin, H*W): contraction dim k = ky*KS*Cin + kx*Cin + ci, spatial last.
    patches = taps.reshape(N, K9, H * W).astype(jnp.bfloat16)

    scale = (gamma / jnp.sqrt(running_var + eps)).astype(jnp.float32)      # (Cout,)
    # Fold BN scale into the conv weights; lay out as (Cout, 9*Cin) for the MXU.
    w_mat = jnp.transpose(w * scale, (3, 0, 1, 2)).reshape(Cout, K9)
    w_mat = w_mat.astype(jnp.bfloat16)
    bias = (beta - running_mean * scale).reshape(Cout, 1).astype(jnp.float32)

    # Spatial tiling: TH rows per step so the lane extent TH*W is a multiple of 128.
    tile_h = 8 if (H % 8 == 0 and (8 * W) % 128 == 0) else H
    hb = H // tile_h
    tw = tile_h * W

    out = pl.pallas_call(
        convbnrelu_kernel,
        out_shape=jax.ShapeDtypeStruct((N, Cout, H * W), jnp.float32),
        grid_spec=pltpu.PrefetchScalarGridSpec(
            num_scalar_prefetch=0,
            grid=(N, hb),
            in_specs=[
                pl.BlockSpec((1, K9, tw), lambda n, h: (n, 0, h)),
                pl.BlockSpec((Cout, K9), lambda n, h: (0, 0)),   # resident weights
                pl.BlockSpec((Cout, 1), lambda n, h: (0, 0)),    # resident bias
            ],
            out_specs=pl.BlockSpec((1, Cout, tw), lambda n, h: (n, 0, h)),
        ),
        compiler_params=pltpu.CompilerParams(
            dimension_semantics=("parallel", "parallel")),
    )(patches, w_mat, bias)

    # Free metadata reshape back to NCHW (no transpose pass needed).
    return out.reshape(N, Cout, H, W)


def _reference(x_nchw, w, gamma, beta, running_mean, running_var, eps=1e-5):
    """Pure-JAX reference mirroring the kernel's bf16 operand rounding.

    The kernel rounds the activations and the scale-folded weights to bf16 and
    accumulates in f32 on the MXU; this reference applies the same operand
    quantization and then runs a full-precision conv, so the only remaining
    difference is f32 accumulation order.
    """
    scale = gamma / jnp.sqrt(running_var + eps)
    bias = beta - running_mean * scale
    x_q = x_nchw.astype(jnp.bfloat16).astype(jnp.float32)
    w_fold_q = (w * scale).astype(jnp.bfloat16).astype(jnp.float32)   # (KS,KS,Cin,Cout)
    w_oihw = jnp.transpose(w_fold_q, (3, 2, 0, 1))
    y = jax.lax.conv_general_dilated(
        x_q, w_oihw, window_strides=(1, 1), padding=((1, 1), (1, 1)),
        dimension_numbers=("NCHW", "OIHW", "NCHW"),
        precision=jax.lax.Precision.HIGHEST)
    y = y + bias[None, :, None, None]
    return jnp.maximum(y, 0.0)


if __name__ == "__main__":
    key = jax.random.PRNGKey(0)
    N, Cin, Cout, H, W = 2, 4, 8, 16, 16

    kx, kw = jax.random.split(key)
    x = jax.random.normal(kx, (N, Cin, H, W), dtype=jnp.float32)

    # kaiming_normal_(a=1): gain = sqrt(2/(1+a^2)) = 1, fan_in = Cin*ks*ks
    std = 1.0 / (Cin * KS * KS) ** 0.5
    w = std * jax.random.normal(kw, (KS, KS, Cin, Cout), dtype=jnp.float32)

    # BatchNorm2d fresh-init parameters (inference semantics).
    gamma = jnp.ones((Cout,), jnp.float32)
    beta = jnp.zeros((Cout,), jnp.float32)
    running_mean = jnp.zeros((Cout,), jnp.float32)
    running_var = jnp.ones((Cout,), jnp.float32)

    out = conv_bn_relu(x, w, gamma, beta, running_mean, running_var)
    out = jax.block_until_ready(out)

    ref = _reference(x, w, gamma, beta, running_mean, running_var)
    assert out.shape == (N, Cout, H, W)
    assert jnp.allclose(out, ref, atol=1e-3, rtol=1e-3), float(
        jnp.max(jnp.abs(out - ref)))

    print("KERNEL_OK")
</pallas_src>

<mosaic_0001>
module attributes {stable_mosaic.version = 11 : i64} {
  func.func @convbnrelu_kernel(%arg0: i32, %arg1: i32, %arg2: memref<1x36x128xbf16, #tpu.memory_space<vmem>>, %arg3: memref<8x36xbf16, #tpu.memory_space<vmem>>, %arg4: memref<8x1xf32, #tpu.memory_space<vmem>>, %arg5: memref<1x8x128xf32, #tpu.memory_space<vmem>>) attributes {dimension_semantics = [#tpu.dimension_semantics<parallel>, #tpu.dimension_semantics<parallel>], iteration_bounds = array<i64: 2, 2>, scalar_prefetch = 0 : i64, scratch_operands = 0 : i64, tpu.core_type = #tpu.core_type<tc>, window_params = [{transform_indices = @transform_0, window_bounds = array<i64: 1, 36, 128>}, {pipeline_mode = #tpu.pipeline_mode<synchronous>, transform_indices = @transform_1, window_bounds = array<i64: 8, 36>}, {pipeline_mode = #tpu.pipeline_mode<synchronous>, transform_indices = @transform_2, window_bounds = array<i64: 8, 1>}, {transform_indices = @transform_3, window_bounds = array<i64: 1, 8, 128>}]} {
    %c0 = arith.constant 0 : index
    %c0_0 = arith.constant 0 : index
    %0 = vector.load %arg3[%c0, %c0_0] : memref<8x36xbf16, #tpu.memory_space<vmem>>, vector<8x36xbf16>
    %c0_1 = arith.constant 0 : index
    %c0_2 = arith.constant 0 : index
    %c0_3 = arith.constant 0 : index
    %1 = vector.load %arg2[%c0_1, %c0_2, %c0_3] : memref<1x36x128xbf16, #tpu.memory_space<vmem>>, vector<1x36x128xbf16>
    %2 = vector.shape_cast %1 : vector<1x36x128xbf16> to vector<36x128xbf16>
    %cst = arith.constant dense<0.000000e+00> : vector<8x128xf32>
    %3 = tpu.matmul %0, %2, %cst {dimension_numbers = #tpu.dot_dimension_numbers<[1], [0], [0], [1], [0, 0, 1, 1], [], []>} : vector<8x36xbf16>, vector<36x128xbf16>, vector<8x128xf32> -> vector<8x128xf32>
    %c0_4 = arith.constant 0 : index
    %c0_5 = arith.constant 0 : index
    %4 = vector.load %arg4[%c0_4, %c0_5] : memref<8x1xf32, #tpu.memory_space<vmem>>, vector<8x1xf32>
    %5 = vector.broadcast %4 : vector<8x1xf32> to vector<8x128xf32>
    %6 = arith.addf %3, %5 : vector<8x128xf32>
    %cst_6 = arith.constant 0.000000e+00 : f32
    %7 = vector.broadcast %cst_6 : f32 to vector<8x128xf32>
    %8 = arith.maximumf %6, %7 : vector<8x128xf32>
    %9 = vector.shape_cast %8 : vector<8x128xf32> to vector<1x8x128xf32>
    %c0_7 = arith.constant 0 : index
    %c0_8 = arith.constant 0 : index
    %c0_9 = arith.constant 0 : index
    %10 = vector.load %arg5[%c0_7, %c0_8, %c0_9] : memref<1x8x128xf32, #tpu.memory_space<vmem>>, vector<1x8x128xf32>
    tpu.vector_store %arg5[%c0_7, %c0_8, %c0_9], %9 {strides = array<i32>} : memref<1x8x128xf32, #tpu.memory_space<vmem>>, vector<1x8x128xf32>,
    return
  }
  func.func @transform_0(%arg0: i32, %arg1: i32) -> (i32, i32, i32) {
    %c0_i32 = arith.constant 0 : i32
    %c0_i32_0 = arith.constant 0 : i32
    return %arg0, %c0_i32, %arg1 : i32, i32, i32
  }
  func.func @transform_1(%arg0: i32, %arg1: i32) -> (i32, i32) {
    %c0_i32 = arith.constant 0 : i32
    %c0_i32_0 = arith.constant 0 : i32
    %c0_i32_1 = arith.constant 0 : i32
    return %c0_i32, %c0_i32_0 : i32, i32
  }
  func.func @transform_2(%arg0: i32, %arg1: i32) -> (i32, i32) {
    %c0_i32 = arith.constant 0 : i32
    %c0_i32_0 = arith.constant 0 : i32
    %c0_i32_1 = arith.constant 0 : i32
    return %c0_i32, %c0_i32_0 : i32, i32
  }
  func.func @transform_3(%arg0: i32, %arg1: i32) -> (i32, i32, i32) {
    %c0_i32 = arith.constant 0 : i32
    %c0_i32_0 = arith.constant 0 : i32
    return %arg0, %c0_i32, %arg1 : i32, i32, i32
  }
}

</mosaic_0001>

<bundles_post_ra>
// kernel: tpu_custom_call.1
= control target key start
LH: loop header
LB: loop body
LE: loop exit
PB: predicated region body
PF: predicated region fallthrough
CT: control target
= control target key end

     0   :  { %8 = vsyncpa [#allocation4], 0  ;;  %s803_s0 = inlined_call_operand.vmem [shape: bf16[2,36,256], index: 0, kind: input, shape index: {}]   ;;  %s804_s1 = inlined_call_operand.vmem [shape: bf16[8,36], index: 1, kind: input, shape index: {}]   ;;  %s805_s2 = inlined_call_operand.vmem [shape: f32[8,1], index: 2, kind: input, shape index: {}]   ;;  %s806_s3 = inlined_call_operand.hbm [shape: f32[2,8,256], index: 3, kind: output, shape index: {}]  }
   0x1   :  { %10 = vsyncpa [#allocation4 + $0x1], 0  ;;  %s649_s12 = smov 0   ;;  %s651_s13 = smov 0  }
   0x2   :  { %s653_s14 = smov 0   ;;  %s655_s15 = smov 0  }
   0x3   :  { %s657_s16 = smov 0   ;;  %s659_s17 = smov 0  }
   0x4   :  { %s661_s18 = smov 0   ;;  %s663_s19 = smov 0  }
   0x5 LB: > { %s420_s20 = sadd.s32 4294967295, %s623_s19   ;;  %s421_s21 = sadd.s32 4294967294, %s623_s19   ;;  %s623_s19 = sphi %s663_s19, %s16_s19   ;;  %s619_s18 = sphi %s661_s18, %s816_s18   ;;  %s615_s17 = sphi %s659_s17, %s815_s17   ;;  %s611_s16 = sphi %s657_s16, %s814_s16   ;;  %s607_s15 = sphi %s655_s15, %s813_s15   ;;  %s603_s14 = sphi %s653_s14, %s812_s14   ;;  %s599_s13 = sphi %s651_s13, %s811_s13   ;;  %s595_s12 = sphi %s649_s12, %s810_s12  }
   0x6   : > { %s25_s22 = sadd.s32 1, %s615_s17  ;;  %s28_s23 = sadd.s32 1, %s619_s18 }
   0x7   : > { %p26_p0 = scmp.ge.s32.totalorder %s25_s22, 2  ;;  %p44_p1 = scmp.ne.s32.totalorder %s603_s14, %s599_s13 }
   0x8   : > { %p45_p2 = scmp.eq.s32.totalorder %s623_s19, 0  ;;  %p118_p5 = scmp.eq.s32.totalorder %s420_s20, 3 }
   0x9   : > { %s818_s22 = smov (%p26_p0, %s25_s22), 0  ;;  %s820_s23 = smov (!%p26_p0, %s28_s23), %s619_s18 }
   0xa   : > { %s33_s24 = ssub.s32 %s615_s17, %s818_s22  ;;  %p701_p3 = por %p45_p2, %p44_p1 }
   0xb   : > { %p30_p4 = scmp.ge.s32.totalorder %s820_s23, 2  ;;  %p123_p6 = scmp.ne.s32.totalorder %s599_s13, %s595_s12 }
   0xc   : > { %p124_p7 = scmp.eq.s32.totalorder %s421_s21, 3  ;;  %p709_p8 = por %p118_p5, %p44_p1 }
   0xd   : > { %s822_s23 = smov (%p30_p4, %s820_s23), 0  ;;  %s37_s30 = sadd.s32 1, %s603_s14 }
   0xe   : > { %p713_p9 = por %p124_p7, %p123_p6  ;;  %s32_s28 = ssub.s32 %s619_s18, %s822_s23 }
   0xf   : > { %s34_s29 = sor.u32 %s33_s24, %s32_s28  ;;  %p423_p11 = scmp.ge.s32.totalorder %s623_s19, 4 }
  0x10   : > { %p35_p10 = scmp.eq.s32.totalorder %s34_s29, 0 }
  0x11   : > { %146 = sbr.rel (%p423_p11) target bundleno = 32 (0x20), region = 24 }
  0x12   : > { %s721_s4 = scalar_select %p35_p10, %s603_s14, %s37_s30  }
  0x16   : > { %149 = sbr.rel (!%p701_p3) target bundleno = 32 (0x20), region = 28  ;;  %s151_s5 = sand.u32 (%p701_p3), 1, %s603_s14  }
  0x17   : > { %s451_s6 = smul.u32 (%p701_p3), 10, %s619_s18 }
  0x18   : > { %s450_s7 = smul.u32 (%p701_p3), 20, %s151_s5 }
  0x19   : > { %s155_s8 = sadd.s32 (%p701_p3), %s615_s17, %s451_s6 }
  0x1a   : > { %s424_s9 = sshll.u32 (%p701_p3), %s155_s8, 2  ;;  %s153_s21 = scalar_lea.vmem (%p701_p3), [#allocation2], %s450_s7 }
  0x1b   : > { %s157_s20 = scalar_lea.vmem %s803_s0, %s424_s9 }
  0x1c   : > { %v174_v0 = vld [vmem:[%s157_s20] sm:$0xf]  ;;  %v176_v1 = vld [vmem:[%s157_s20 + $0x8] sm:$0xf]  ;;  %v178_v2 = vld [vmem:[%s157_s20 + $0x10] sm:$0xf] }
  0x1d   : > { %175 = vst [vmem:[%s153_s21] sm:$0xf] %v174_v0  ;;  %177 = vst [vmem:[%s153_s21 + $0x4] sm:$0xf] %v176_v1  ;;  %v180_v3 = vld [vmem:[%s157_s20 + $0x18] sm:$0xf] }
  0x1e   : > { %179 = vst [vmem:[%s153_s21 + $0x8] sm:$0xf] %v178_v2  ;;  %v182_v4 = vld [vmem:[%s157_s20 + $0x20] sm:$0xf]  ;;  %181 = vst [vmem:[%s153_s21 + $0xc] sm:$0xf] %v180_v3 }
  0x1f   : > { %183 = vst [vmem:[%s153_s21 + $0x10] sm:$0xf] %v182_v4 }
  0x20 PF: > { %p425_p12 = scmp.ge.s32.totalorder %s623_s19, 1  ;;  %p216_p13 = scmp.lt.s32.totalorder %s623_s19, 5 }
  0x22   : > { %p217_p0 = pnand %p425_p12, %p216_p13 }
  0x23   : > { %s735_s24 = sand.u32 (!%p217_p0), 1, %s599_s13   ;;  %s432_s8 = sshll.u32 (!%p217_p0), %s611_s16, 1 }
  0x24   : > { %220 = sbr.rel (%p217_p0) target bundleno = 266 (0x10a), region = 69  ;;  %s426_s7 = sshll.u32 (!%p217_p0), %s735_s24, 3 }
  0x25   : > { %s452_s25 = smul.u32 (!%p217_p0), 20, %s735_s24  ;;  %s336_s9 = sadd.s32 (!%p217_p0), %s607_s15, %s432_s8 }
  0x26   : > { %s433_s10 = sshll.u32 (!%p217_p0), %s336_s9, 7  ;;  %s245_s11 = scalar_lea.vmem (!%p217_p0), [#allocation3], %s426_s7 }
  0x27   : > { %s225_s30 = scalar_lea.vmem (!%p217_p0), [#allocation2], %s452_s25  ;;  %s340_s20 = sshll.u32 (!%p217_p0), %s245_s11, 4  ;;  %s752_s20 = int_to_ptr.vmem [resolvable:$true] %s340_s20 }
  0x28   : > { %s750_s28 = scalar_lea.hbm (!%p217_p0), %s806_s3, %s433_s10  ;;  %s325_s15 = scalar_lea.sflag (!%p217_p0), [#allocation4], %s735_s24 }
  0x29   : > { %v625_v5 = vmov 0.0   ;;  %vm626_vm0 = vmmov 0   ;;  %v253_v6 = vld [vmem:[%s805_s2] sm:$0xff]  ;;  %v627_v7 = vmov 0   ;;  %vm278_vm1 = vcmask 1041408   ;;  %s531_s16 = scalar_lea.vmem %s752_s20, 128 }
  0x2a   : > { %440 = vmatprep.subr.bf16.mxu0 %v625_v5  ;;  %446 = vmatprep.mubr.msk.bf16.mxu0 %vm626_vm0, %v625_v5  ;;  %v528_v8 = vld [vmem:[%s225_s30 + $0x10] ss:$0 sps:$4 sm:$0x33]   ;;  %v529_v10 = vld [vmem:[%s225_s30 + $0x8] sm:$0xff]   ;;  %v530_v11 = vld [vmem:[%s225_s30] sm:$0xff]   ;;  %vm274_vm2 = vcmask 293888   ;;  %p532_p1 = scmp.ne.s32.totalorder %s752_s20, %s531_s16 }
  0x2b   : > { %527 = vset.pattern.permute.xlu0 %v627_v7  ;;  %v280_v9 = vsel %vm278_vm1, %v528_v8, 0  ;;  %v247_v12 = vld [vmem:[%s804_s1] sm:$0xf]  ;;  %s628_s29 = smov [#allocation3]  }
  0x2c   : > { %256 = vperm.xlu0 %527, %v253_v6   ;;  %441 = vmatpush3.bf16.msra.mxu0 %v280_v9  ;;  %p533_p2 = pnand %p532_p1, %p709_p8  ;;  %s535_s30 = sshll.u32 %s628_s29, 4  ;;  %s536_s30 = int_to_ptr.vmem [resolvable:$false] %s535_s30 }
  0x2d   : > { %442 = vmatprep.subr.bf16.mxu0 %v625_v5  ;;  %s537_s5 = scalar_lea.vmem %s536_s30, 256  ;;  %p538_p4 = scmp.lt.s32.totalorder %s752_s20, %s536_s30 }
  0x2e   : > { %p534_p3 = pneg %p533_p2  ;;  %p539_p5 = scmp.lt.s32.totalorder %s537_s5, %s531_s16 }
  0x30   : > { %443 = vmatpush3.bf16.msra.mxu0 %v529_v10  ;;  %p540_p6 = por %p539_p5, %p538_p4 }
  0x31   : > { %444 = vmatprep.subr.bf16.mxu0 %v625_v5 }
  0x32   : > { %p541_p7 = pnand %p540_p6, %p534_p3 }
  0x34   : > { %445 = vmatpush3.bf16.msra.mxu0 %v530_v11 }
  0x37   : > { %447 = vmatmul.mubr.msk.bf16.vlgmr.msra.gmra.mxu0 %vm274_vm2, %v247_v12 }
  0xa7   : > { %v257_v13 = vpop.permute.xlu0 %256 }
  0xf7   : > { %v316_v14 = vpop.f32.mrf.mxu0 }
  0xf8   : > { %v317_v15 = vadd.f32 %v316_v14, %v257_v13 }
  0xf9   : > { %v448_v16 = vpop.f32.mrf.mxu0 }
  0xfa   : > { %v322_v17 = vmax.f32 %v317_v15, 0.0 }
  0xfb   : > { %v319_v18 = vpop.f32.mrf.mxu0 }
  0xfc   : > { %323 = vst [vmem:[%s245_s11] sm:$0xff] %v322_v17 }
  0xfd   : > { %v449_v19 = vpop.f32.mrf.mxu0 }
  0xfe   : > { %544 = shalt.err (!%p541_p7)
}
  0xff   : > { %s545_s6 = scalar_lea.hbm %s750_s28, 128  ;;  %s549_s8 = scalar_lea.hbm %s806_s3, 512 }
 0x100   : > { %p546_p10 = scmp.ne.s32.totalorder %s750_s28, %s545_s6  ;;  %p550_p13 = scmp.lt.s32.totalorder %s750_s28, %s806_s3 }
 0x101   : > { %p551_p0 = scmp.lt.s32.totalorder %s549_s8, %s545_s6 }
 0x102   : > { %p547_p11 = pnand %p546_p10, %p709_p8 }
 0x103   : > { %p552_p1 = por %p551_p0, %p550_p13 }
 0x104   : > { %p548_p12 = pneg %p547_p11 }
 0x106   : > { %p553_p2 = pnand %p552_p1, %p548_p12 }
 0x108   : > { %556 = shalt.err (!%p553_p2)
}
 0x109   : > { %453 = dma.vmem_to_hbm [thread:$0]  (%p709_p8), %s752_s20, 128, %s750_s28, %s325_s15  }
 0x10a PF: > { %p459_p3 = scmp.ge.s32.totalorder %s623_s19, 2  ;;  %s352_s11 = sand.u32 1, %s595_s12  }
 0x10b   : > { %s353_s21 = scalar_lea.sflag [#allocation4], %s352_s11 }
 0x10c   : > { %p456_p4 = pnand %p459_p3, %p713_p9 }
 0x10e   : > { %p457_p5 = pneg %p456_p4 }
 0x110   : > { %590 = dma.done.wait (%p457_p5), %s353_s21, 128  }
 0x111   : > { %592 = vsyncadd (%p457_p5), %s353_s21, 4294967168  ;;  %s16_s19 = sadd.s32 1, %s623_s19   ;;  %s810_s12 = smov %s599_s13 }
 0x112   : > { %p13_p6 = scmp.ge.s32.totalorder %s16_s19, 6   ;;  %s811_s13 = smov %s603_s14 }
 0x113   : > { %s812_s14 = smov %s721_s4  ;;  %s813_s15 = smov %s615_s17 }
 0x114   : > { %s814_s16 = smov %s619_s18  ;;  %s815_s17 = smov %s818_s22 }
 0x115   : > { %s816_s18 = smov %s822_s23  ;;  %15 = sbr.rel (!%p13_p6) target bundleno = 5 (0x5), region = 113 }
 0x11a   :  { %358 = vsyncpa [#allocation4], 1 }
 0x11b   :  { %360 = vsyncpa [#allocation4 + $0x1], 1 }

</bundles_post_ra>
